<compile_context>
chip_gen: v5e
topology: v5e:2x2
jax: 0.10.0
libtpu: 0.0.40
codegen_flags: <defaults>
</compile_context>

<pallas_src>
import functools

import jax
import jax.numpy as jnp
from jax.experimental import pallas as pl
from jax.experimental.pallas import tpu as pltpu

_LANES = 128
_TILE_BYTES = 4 * 1024 * 1024    # per-buffer VMEM tile budget (f32 -> 8192 rows)
_SMALL_BYTES = 2 * 1024 * 1024   # below this, run the whole array as one block
_VMEM_LIMIT = 32 * 1024 * 1024   # 16 MiB of pipeline buffers + headroom; legal
                                 # on v5e/v6e (128 MiB phys) and v7x (64 MiB)


def _tiled_kernel(shift_ref, inv_scale_ref, x_ref, o_ref, *, num_channels,
                  row_tiles):
    # Flat grid: g enumerates (n, c, row_tile) lexicographically.
    g = pl.program_id(0)
    ch = (g // row_tiles) % num_channels
    shift = shift_ref[ch]
    inv_scale = inv_scale_ref[ch]
    o_ref[...] = ((x_ref[...] - shift) * inv_scale).astype(o_ref.dtype)


def _small_kernel(shift_ref, inv_scale_ref, x_ref, o_ref, *, num_channels):
    # Whole array in one VMEM block; channel count is tiny (3), so a static
    # Python loop over channels is fine.
    for ch in range(num_channels):
        o_ref[:, ch, :, :] = (
            (x_ref[:, ch, :, :] - shift_ref[ch]) * inv_scale_ref[ch]
        ).astype(o_ref.dtype)


def _pick_rows_tile(rows, itemsize):
    """Dtype-aware row tile: multiple of the sublane packing minimum, sized so
    one buffer is ~_TILE_BYTES. Falls back to the full extent when the array
    is smaller than the budget (full extent is always a legal block shape)."""
    sub = max(8 * (4 // itemsize), 8)          # 8 f32 / 16 bf16 / 32 int8|fp8
    budget_rows = max(_TILE_BYTES // (_LANES * itemsize), sub)
    tile = (budget_rows // sub) * sub
    if tile >= rows:
        return rows
    return tile


def scaling_layer(x, shift, scale):
    """(x - shift[None,:,None,None]) / scale[None,:,None,None], NCHW."""
    n, c, h, w = x.shape
    assert shift.shape == (c,) and scale.shape == (c,)

    shift_f32 = shift.astype(jnp.float32)
    inv_scale_f32 = (1.0 / scale).astype(jnp.float32)   # divide hoisted out

    itemsize = jnp.dtype(x.dtype).itemsize
    hw = h * w
    pad = (-hw) % _LANES

    x_flat = x.reshape(n, c, hw)
    if pad:
        # Lane-dense everywhere: pad the flattened spatial axis to a multiple
        # of 128 so every store is a full unmasked 128-lane vst.
        x_flat = jnp.pad(x_flat, ((0, 0), (0, 0), (0, pad)))
    hw_p = hw + pad
    rows = hw_p // _LANES
    xr = x_flat.reshape(n, c, rows, _LANES)

    total_bytes = n * c * rows * _LANES * itemsize
    smem_specs = [
        pl.BlockSpec(memory_space=pltpu.MemorySpace.SMEM),   # shift     f32[C]
        pl.BlockSpec(memory_space=pltpu.MemorySpace.SMEM),   # inv_scale f32[C]
    ]

    if total_bytes <= _SMALL_BYTES:
        # Small-tensor escape: one block, zero per-step grid overhead.
        out = pl.pallas_call(
            functools.partial(_small_kernel, num_channels=c),
            out_shape=jax.ShapeDtypeStruct((n, c, rows, _LANES), x.dtype),
            in_specs=smem_specs + [
                pl.BlockSpec(memory_space=pltpu.MemorySpace.VMEM),
            ],
            out_specs=pl.BlockSpec(memory_space=pltpu.MemorySpace.VMEM),
        )(shift_f32, inv_scale_f32, xr)
    else:
        rows_tile = _pick_rows_tile(rows, itemsize)
        row_tiles = -(-rows // rows_tile)        # cdiv; partial block is masked
        grid = (n * c * row_tiles,)              # single flat "parallel" axis
                                                 # -> even megacore split on v7x

        def data_index(g):
            return (g // (c * row_tiles), (g // row_tiles) % c, g % row_tiles, 0)

        out = pl.pallas_call(
            functools.partial(_tiled_kernel, num_channels=c,
                              row_tiles=row_tiles),
            out_shape=jax.ShapeDtypeStruct((n, c, rows, _LANES), x.dtype),
            grid=grid,
            in_specs=smem_specs + [
                pl.BlockSpec((1, 1, rows_tile, _LANES), data_index),
            ],
            out_specs=pl.BlockSpec((1, 1, rows_tile, _LANES), data_index),
            compiler_params=pltpu.CompilerParams(
                dimension_semantics=("parallel",),
                vmem_limit_bytes=_VMEM_LIMIT,
            ),
        )(shift_f32, inv_scale_f32, xr)

    out = out.reshape(n, c, hw_p)
    if pad:
        out = out[:, :, :hw]
    return out.reshape(n, c, h, w)


def _reference(x, shift, scale):
    return (x - shift[None, :, None, None]) / scale[None, :, None, None]


if __name__ == "__main__":
    # Deterministic buffers, exactly as registered in ScalingLayer.__init__.
    shift = jnp.array([-0.030, -0.088, -0.188], dtype=jnp.float32)
    scale = jnp.array([0.458, 0.448, 0.450], dtype=jnp.float32)

    key = jax.random.PRNGKey(0)
    k0, k1, k2 = jax.random.split(key, 3)

    # 1) Small NCHW input consistent with the module (3 channels) — exercises
    #    the single-block escape path.
    x_small = jax.random.normal(k0, (2, 3, 16, 16), dtype=jnp.float32)
    out_small = jax.block_until_ready(scaling_layer(x_small, shift, scale))
    assert out_small.shape == x_small.shape
    assert jnp.allclose(out_small, _reference(x_small, shift, scale),
                        atol=1e-5, rtol=1e-5)

    # 2) Odd spatial size (H*W not a multiple of 128) — exercises the
    #    lane-dense padding path.
    x_odd = jax.random.normal(k1, (2, 3, 17, 19), dtype=jnp.float32)
    out_odd = jax.block_until_ready(scaling_layer(x_odd, shift, scale))
    assert out_odd.shape == x_odd.shape
    assert jnp.allclose(out_odd, _reference(x_odd, shift, scale),
                        atol=1e-5, rtol=1e-5)

    # 3) Medium image — exercises the tiled flat-grid path (channel decode
    #    from the flat grid index).
    x_med = jax.random.normal(k2, (2, 3, 320, 320), dtype=jnp.float32)
    out_med = jax.block_until_ready(scaling_layer(x_med, shift, scale))
    assert out_med.shape == x_med.shape
    assert jnp.allclose(out_med, _reference(x_med, shift, scale),
                        atol=1e-5, rtol=1e-5)

    print("KERNEL_OK")
</pallas_src>

<mosaic_0001>
module attributes {stable_mosaic.version = 11 : i64} {
  func.func @_small_kernel(%arg0: memref<3xf32, #tpu.memory_space<smem>>, %arg1: memref<3xf32, #tpu.memory_space<smem>>, %arg2: memref<2x3x2x128xf32, #tpu.memory_space<vmem>>, %arg3: memref<2x3x2x128xf32, #tpu.memory_space<vmem>>) attributes {dimension_semantics = [], scalar_prefetch = 0 : i64, scratch_operands = 0 : i64, tpu.core_type = #tpu.core_type<tc>} {
    %c0 = arith.constant 0 : index
    %c0_0 = arith.constant 0 : index
    %c0_1 = arith.constant 0 : index
    %c0_2 = arith.constant 0 : index
    %0 = vector.load %arg2[%c0, %c0_0, %c0_1, %c0_2] : memref<2x3x2x128xf32, #tpu.memory_space<vmem>>, vector<2x1x2x128xf32>
    %1 = vector.shape_cast %0 : vector<2x1x2x128xf32> to vector<2x2x128xf32>
    %c0_3 = arith.constant 0 : index
    %2 = memref.load %arg0[%c0_3] : memref<3xf32, #tpu.memory_space<smem>>
    %3 = vector.broadcast %2 : f32 to vector<2x2x128xf32>
    %4 = arith.subf %1, %3 : vector<2x2x128xf32>
    %c0_4 = arith.constant 0 : index
    %5 = memref.load %arg1[%c0_4] : memref<3xf32, #tpu.memory_space<smem>>
    %6 = vector.broadcast %5 : f32 to vector<2x2x128xf32>
    %7 = arith.mulf %4, %6 : vector<2x2x128xf32>
    %c0_5 = arith.constant 0 : index
    %c0_6 = arith.constant 0 : index
    %c0_7 = arith.constant 0 : index
    %c0_8 = arith.constant 0 : index
    %8 = vector.load %arg3[%c0_5, %c0_6, %c0_7, %c0_8] : memref<2x3x2x128xf32, #tpu.memory_space<vmem>>, vector<2x1x2x128xf32>
    %9 = vector.shape_cast %8 : vector<2x1x2x128xf32> to vector<2x2x128xf32>
    %10 = vector.shape_cast %7 : vector<2x2x128xf32> to vector<2x1x2x128xf32>
    tpu.vector_store %arg3[%c0_5, %c0_6, %c0_7, %c0_8], %10 {strides = array<i32>} : memref<2x3x2x128xf32, #tpu.memory_space<vmem>>, vector<2x1x2x128xf32>,
    %c0_9 = arith.constant 0 : index
    %c1 = arith.constant 1 : index
    %c0_10 = arith.constant 0 : index
    %c0_11 = arith.constant 0 : index
    %11 = vector.load %arg2[%c0_9, %c1, %c0_10, %c0_11] : memref<2x3x2x128xf32, #tpu.memory_space<vmem>>, vector<2x1x2x128xf32>
    %12 = vector.shape_cast %11 : vector<2x1x2x128xf32> to vector<2x2x128xf32>
    %c1_12 = arith.constant 1 : index
    %13 = memref.load %arg0[%c1_12] : memref<3xf32, #tpu.memory_space<smem>>
    %14 = vector.broadcast %13 : f32 to vector<2x2x128xf32>
    %15 = arith.subf %12, %14 : vector<2x2x128xf32>
    %c1_13 = arith.constant 1 : index
    %16 = memref.load %arg1[%c1_13] : memref<3xf32, #tpu.memory_space<smem>>
    %17 = vector.broadcast %16 : f32 to vector<2x2x128xf32>
    %18 = arith.mulf %15, %17 : vector<2x2x128xf32>
    %c0_14 = arith.constant 0 : index
    %c1_15 = arith.constant 1 : index
    %c0_16 = arith.constant 0 : index
    %c0_17 = arith.constant 0 : index
    %19 = vector.load %arg3[%c0_14, %c1_15, %c0_16, %c0_17] : memref<2x3x2x128xf32, #tpu.memory_space<vmem>>, vector<2x1x2x128xf32>
    %20 = vector.shape_cast %19 : vector<2x1x2x128xf32> to vector<2x2x128xf32>
    %21 = vector.shape_cast %18 : vector<2x2x128xf32> to vector<2x1x2x128xf32>
    tpu.vector_store %arg3[%c0_14, %c1_15, %c0_16, %c0_17], %21 {strides = array<i32>} : memref<2x3x2x128xf32, #tpu.memory_space<vmem>>, vector<2x1x2x128xf32>,
    %c0_18 = arith.constant 0 : index
    %c2 = arith.constant 2 : index
    %c0_19 = arith.constant 0 : index
    %c0_20 = arith.constant 0 : index
    %22 = vector.load %arg2[%c0_18, %c2, %c0_19, %c0_20] : memref<2x3x2x128xf32, #tpu.memory_space<vmem>>, vector<2x1x2x128xf32>
    %23 = vector.shape_cast %22 : vector<2x1x2x128xf32> to vector<2x2x128xf32>
    %c2_21 = arith.constant 2 : index
    %24 = memref.load %arg0[%c2_21] : memref<3xf32, #tpu.memory_space<smem>>
    %25 = vector.broadcast %24 : f32 to vector<2x2x128xf32>
    %26 = arith.subf %23, %25 : vector<2x2x128xf32>
    %c2_22 = arith.constant 2 : index
    %27 = memref.load %arg1[%c2_22] : memref<3xf32, #tpu.memory_space<smem>>
    %28 = vector.broadcast %27 : f32 to vector<2x2x128xf32>
    %29 = arith.mulf %26, %28 : vector<2x2x128xf32>
    %c0_23 = arith.constant 0 : index
    %c2_24 = arith.constant 2 : index
    %c0_25 = arith.constant 0 : index
    %c0_26 = arith.constant 0 : index
    %30 = vector.load %arg3[%c0_23, %c2_24, %c0_25, %c0_26] : memref<2x3x2x128xf32, #tpu.memory_space<vmem>>, vector<2x1x2x128xf32>
    %31 = vector.shape_cast %30 : vector<2x1x2x128xf32> to vector<2x2x128xf32>
    %32 = vector.shape_cast %29 : vector<2x2x128xf32> to vector<2x1x2x128xf32>
    tpu.vector_store %arg3[%c0_23, %c2_24, %c0_25, %c0_26], %32 {strides = array<i32>} : memref<2x3x2x128xf32, #tpu.memory_space<vmem>>, vector<2x1x2x128xf32>,
    return
  }
}

</mosaic_0001>

<bundles_post_ra>
// kernel: tpu_custom_call.1
= control target key start
LH: loop header
LB: loop body
LE: loop exit
PB: predicated region body
PF: predicated region fallthrough
CT: control target
= control target key end

     0   :  { %8 = vsyncpa [#allocation5], 0  ;;  %s251_s0 = inlined_call_operand.hbm [shape: f32[3], index: 0, kind: input, shape index: {}]   ;;  %s252_s1 = inlined_call_operand.hbm [shape: f32[3], index: 1, kind: input, shape index: {}]   ;;  %s253_s2 = inlined_call_operand.hbm [shape: f32[2,3,2,128], index: 2, kind: input, shape index: {}]   ;;  %s254_s3 = inlined_call_operand.hbm [shape: f32[2,3,2,128], index: 3, kind: output, shape index: {}]  }
   0x1   :  { %9 = vsyncpa [#allocation7], 0 }
   0x2   :  { %10 = vsyncpa [#allocation3], 0 }
   0x3   :  { %11 = vsyncpa [#allocation4], 0  ;;  %s17_s14 = sshll.u32 %s251_s0, 4  ;;  %s26_s17 = sshll.u32 %s252_s1, 4  ;;  %s18_s14 = int_to_ptr.hbm [resolvable:$true] %s17_s14  ;;  %s27_s17 = int_to_ptr.hbm [resolvable:$true] %s26_s17 }
   0x4   :  { %s207_s18 = smov [#allocation2]   ;;  %s208_s19 = smov [#allocation6]  }
   0x5   :  { %20 = dma.hbm_to_smem %s18_s14, 16, %s207_s18, [#allocation5]  }
   0x6   :  { %29 = dma.hbm_to_smem %s27_s17, 16, %s208_s19, [#allocation7]  }
   0x7   :  { %s34_s22 = sshll.u32 %s253_s2, 4  ;;  %s209_s23 = smov [#allocation8]   ;;  %s35_s22 = int_to_ptr.hbm [resolvable:$true] %s34_s22 }
   0x8   :  { %s36_s24 = sshll.u32 %s209_s23, 4  ;;  %s210_s25 = smov 32   ;;  %s37_s24 = int_to_ptr.vmem [resolvable:$true] %s36_s24 }
   0x9   :  { %s211_s0 = smov 2  }
   0xa   :  { %42 = dma.hbm_to_vmem [thread:$0]  %s35_s22, 192, %s37_s24, [#allocation3], %s210_s25, %s210_s25, %s211_s0  }
   0xb   :  { %199 = dma.done.wait [#allocation5], 16  }
   0xc   :  { %200 = vsyncadd [#allocation5], 4294967280 }
   0xd   :  { %201 = dma.done.wait [#allocation7], 16  }
   0xe   :  { %202 = vsyncadd [#allocation7], 4294967280 }
   0xf   :  { %203 = dma.done.wait [#allocation3], 192  }
  0x10   :  { %204 = vsyncadd [#allocation3], 4294967104 }
  0x11   :  { %55 = sfence }
  0x12   :  { %s58_s1 = sld [smem:[#allocation2]]  ;;  %v56_v0 = vld [vmem:[#allocation8] sm:$0x3]  ;;  %v57_v1 = vld [vmem:[#allocation8 + $0x6] sm:$0x3]  ;;  %s212_s30 = smov [#allocation9]  }
  0x13   :  { %s62_s26 = sld [smem:[#allocation6]]  ;;  %v69_v3 = vld [vmem:[#allocation8 + $0x2] sm:$0x3]  ;;  %v70_v7 = vld [vmem:[#allocation8 + $0x8] sm:$0x3]  ;;  %s100_s4 = sshll.u32 %s212_s30, 4  ;;  %s101_s4 = int_to_ptr.vmem [resolvable:$true] %s100_s4 }
  0x14   :  { %s117_s2 = sld [smem:[#allocation2 + $0x1]]  ;;  %v83_v9 = vld [vmem:[#allocation8 + $0x4] sm:$0x3]  ;;  %v84_v10 = vld [vmem:[#allocation8 + $0xa] sm:$0x3]  ;;  %s102_s7 = sshll.u32 %s254_s3, 4  ;;  %s103_s7 = int_to_ptr.hbm [resolvable:$true] %s102_s7 }
  0x15   :  { %s118_s27 = sld [smem:[#allocation6 + $0x1]] }
  0x16   :  { %s119_s28 = sld [smem:[#allocation2 + $0x2]] }
  0x17   :  { %s120_s29 = sld [smem:[#allocation6 + $0x2]] }
  0x18   :  { %v59_v2 = vstv %s58_s1 }
  0x19   :  { %v60_v4 = vsub.f32 %v56_v0, %v59_v2  ;;  %v63_v5 = vstv %s62_s26  ;;  %v61_v6 = vsub.f32 %v57_v1, %v59_v2 }
  0x1a   :  { %v72_v8 = vstv %s117_s2 }
  0x1b   :  { %v64_v11 = vmul.f32 %v63_v5, %v60_v4  ;;  %v65_v12 = vmul.f32 %v63_v5, %v61_v6  ;;  %v73_v13 = vsub.f32 %v69_v3, %v72_v8  ;;  %v76_v14 = vstv %s118_s27 }
  0x1c   :  { %v74_v15 = vsub.f32 %v70_v7, %v72_v8  ;;  %v86_v16 = vstv %s119_s28 }
  0x1d   :  { %66 = vst [vmem:[#allocation9] sm:$0x3] %v64_v11  ;;  %v77_v17 = vmul.f32 %v76_v14, %v73_v13  ;;  %v87_v18 = vsub.f32 %v83_v9, %v86_v16  ;;  %v90_v19 = vstv %s120_s29  ;;  %v88_v20 = vsub.f32 %v84_v10, %v86_v16 }
  0x1e   :  { %67 = vst [vmem:[#allocation9 + $0x6] sm:$0x3] %v65_v12  ;;  %v78_v21 = vmul.f32 %v76_v14, %v74_v15 }
  0x1f   :  { %80 = vst [vmem:[#allocation9 + $0x2] sm:$0x3] %v77_v17  ;;  %v91_v22 = vmul.f32 %v90_v19, %v87_v18  ;;  %v92_v23 = vmul.f32 %v90_v19, %v88_v20 }
  0x20   :  { %81 = vst [vmem:[#allocation9 + $0x8] sm:$0x3] %v78_v21 }
  0x21   :  { %94 = vst [vmem:[#allocation9 + $0x4] sm:$0x3] %v91_v22 }
  0x22   :  { %95 = vst [vmem:[#allocation9 + $0xa] sm:$0x3] %v92_v23 }
  0x23   :  { %108 = dma.vmem_to_hbm [thread:$0]  %s101_s4, 192, %s103_s7, [#allocation4], %s210_s25, %s210_s25, %s211_s0  }
  0x24   :  { %205 = dma.done.wait [#allocation4], 192  }
  0x25   :  { %206 = vsyncadd [#allocation4], 4294967104 }
  0x26   :  { %113 = vsyncpa [#allocation3], 1 }
  0x27   :  { %114 = vsyncpa [#allocation4], 1 }
  0x28   :  { %115 = vsyncpa [#allocation5], 1 }
  0x29   :  { %116 = vsyncpa [#allocation7], 1 }

</bundles_post_ra>
